<compile_context>
chip_gen: v5e
topology: v5e:2x2
jax: 0.10.0
libtpu: 0.0.40
codegen_flags: <defaults>
</compile_context>

<pallas_src>
import jax
import jax.numpy as jnp
from jax import lax
from jax.experimental import pallas as pl
from jax.experimental.pallas import tpu as pltpu
import numpy as np

STEPS = 50          # matches IntegratedGradient(steps=50)
NUM_CLASSES = 10


def _ig_kernel(x_ref, w_ref, wt_ref, b_ref, path_ref, sal_ref, accu_ref):
    x = x_ref[0]              # (1, D)
    w = w_ref[...]            # (D, K)
    wt = wt_ref[...]          # (K, D)  pre-transposed weights for the backward
    b = b_ref[...]            # (1, K)
    alphas = path_ref[...]    # (S, 1)  linspace(0, 1, S)
    S = alphas.shape[0]
    K = w.shape[1]

    # Forward logits for the un-scaled input, reused along the whole path
    # (linear net => net(alpha*x) = alpha*xw + b).
    xw = jnp.dot(x, w, preferred_element_type=jnp.float32)        # (1, K)
    logits_s = alphas * xw + b                                     # (S, K)

    ms = jnp.max(logits_s, axis=1, keepdims=True)                  # (S, 1)
    es = jnp.exp(logits_s - ms)                                    # (S, K)
    denom = jnp.sum(es, axis=1, keepdims=True)                     # (S, 1)

    # accu = softmax(net(x)); alphas[S-1] == 1.0 exactly, so the last path row
    # equals the un-scaled logits. Exact division here (tight tolerance).
    accu_ref[0] = es[S - 1:S, :] / denom[S - 1:S, :]

    # target_cls = argmax(net(x)) with torch-style first-max tie-break.
    logits1 = logits_s[S - 1:S, :]                                 # (1, K)
    m1 = ms[S - 1:S, :]                                            # (1, 1)
    iota = lax.broadcasted_iota(jnp.int32, (1, K), 1)
    t_idx = jnp.min(jnp.where(logits1 == m1, iota, K), axis=1, keepdims=True)
    onehot = (iota == t_idx).astype(jnp.float32)                   # (1, K)

    # Path softmax via approximate reciprocal (EUP slot; sal tolerance allows it).
    p = es * pl.reciprocal(denom, approx=True)                     # (S, K)

    # Closed-form gradient of mean_s p_s[target] w.r.t. x_flat.
    pt = jnp.sum(p * onehot, axis=1, keepdims=True)                # (S, 1)
    c = jnp.sum((alphas * pt) * (onehot - p), axis=0, keepdims=True)  # (1, K)

    # Backward: lane-dense (1,K)@(K,D); fold 1/S into the tiny (1,K) vector.
    g = jnp.dot(c * (1.0 / S), wt, preferred_element_type=jnp.float32)  # (1, D)

    # sal = grad * x.detach()
    sal_ref[0] = g * x


def integrated_gradient(x_nchw, W, b, pathes):
    """x_nchw: (B, C, H, W) float32. Processes each image independently over a
    parallel grid axis (equivalent to one module call per image, since the
    target_cls=None path uses .item()). Returns (sal (B,C,H,W), accu (B,K))."""
    B, C, H, Wd = x_nchw.shape
    D = C * H * Wd
    K = W.shape[1]
    S = pathes.shape[0]

    x3 = x_nchw.reshape(B, 1, D).astype(jnp.float32)
    W = W.astype(jnp.float32)
    Wt = jnp.transpose(W)                       # (K, D) pre-transposed (wrapper-side)
    b2 = b.reshape(1, K).astype(jnp.float32)
    path2 = pathes.reshape(S, 1).astype(jnp.float32)

    sal3, accu3 = pl.pallas_call(
        _ig_kernel,
        out_shape=(
            jax.ShapeDtypeStruct((B, 1, D), jnp.float32),
            jax.ShapeDtypeStruct((B, 1, K), jnp.float32),
        ),
        grid_spec=pltpu.PrefetchScalarGridSpec(
            num_scalar_prefetch=0,
            grid=(B,),
            in_specs=[
                pl.BlockSpec((1, 1, D), lambda i: (i, 0, 0)),   # x (per image)
                pl.BlockSpec((D, K), lambda i: (0, 0)),         # W   (resident)
                pl.BlockSpec((K, D), lambda i: (0, 0)),         # W^T (resident)
                pl.BlockSpec((1, K), lambda i: (0, 0)),         # b
                pl.BlockSpec((S, 1), lambda i: (0, 0)),         # pathes
            ],
            out_specs=[
                pl.BlockSpec((1, 1, D), lambda i: (i, 0, 0)),   # sal
                pl.BlockSpec((1, 1, K), lambda i: (i, 0, 0)),   # accu
            ],
        ),
        compiler_params=pltpu.CompilerParams(
            dimension_semantics=("parallel",)),
    )(x3, W, Wt, b2, path2)

    return sal3.reshape(x_nchw.shape), accu3.reshape(B, K)


def _reference(x_nchw, W, b, pathes):
    """Pure-JAX reference mirroring the PyTorch module semantics per image."""
    B = x_nchw.shape[0]
    x_flat = x_nchw.reshape(B, -1).astype(jnp.float32)
    sals, accus = [], []
    for i in range(B):
        xf = x_flat[i:i + 1]
        logits1 = xf @ W + b
        accus.append(jax.nn.softmax(logits1, axis=1))
        t = jnp.argmax(logits1, axis=1)[0]

        def loss(xr, t=t):
            logits_s = pathes.reshape(-1, 1) * (xr @ W) + b   # net(alpha * x)
            p = jax.nn.softmax(logits_s, axis=1)
            return p[:, t].mean()

        g = jax.grad(loss)(xf)
        sals.append(g * xf)
    sal = jnp.concatenate(sals, 0).reshape(x_nchw.shape)
    accu = jnp.concatenate(accus, 0)
    return sal, accu


if __name__ == "__main__":
    key = jax.random.PRNGKey(0)
    kx, kw, kb = jax.random.split(key, 3)

    # Small shapes consistent with the module: batch=2 (grid axis, one module
    # call per image), channels=4, spatial=16x16 -> D=1024 features, 10 classes.
    B, C, H, Wd = 2, 4, 16, 16
    D = C * H * Wd

    x = jax.random.normal(kx, (B, C, H, Wd), dtype=jnp.float32)
    W = (0.02 * jax.random.normal(kw, (D, NUM_CLASSES))).astype(jnp.float32)
    b = (0.01 * jax.random.normal(kb, (1, NUM_CLASSES))).astype(jnp.float32)
    pathes = jnp.linspace(0.0, 1.0, STEPS, dtype=jnp.float32)

    sal, accu = integrated_gradient(x, W, b, pathes)
    jax.block_until_ready((sal, accu))

    sal_ref, accu_ref = _reference(x, W, b, pathes)
    np.testing.assert_allclose(np.asarray(accu), np.asarray(accu_ref),
                               rtol=1e-5, atol=1e-6)
    # sal tolerance loosened slightly to accommodate the EUP approximate
    # reciprocal used for the path softmax (still far tighter than any
    # formula-level error would produce).
    np.testing.assert_allclose(np.asarray(sal), np.asarray(sal_ref),
                               rtol=2e-3, atol=1e-6)

    # TODO(synk): sec_ord=True (create_graph / second-order) path not implemented;
    # only the default target_cls=None, first-order forward is reproduced.
    print("KERNEL_OK")
</pallas_src>

<mosaic_0001>
module attributes {stable_mosaic.version = 11 : i64} {
  func.func @_ig_kernel(%arg0: i32, %arg1: memref<1x1x1024xf32, #tpu.memory_space<vmem>>, %arg2: memref<1024x10xf32, #tpu.memory_space<vmem>>, %arg3: memref<10x1024xf32, #tpu.memory_space<vmem>>, %arg4: memref<1x10xf32, #tpu.memory_space<vmem>>, %arg5: memref<50x1xf32, #tpu.memory_space<vmem>>, %arg6: memref<1x1x1024xf32, #tpu.memory_space<vmem>>, %arg7: memref<1x1x10xf32, #tpu.memory_space<vmem>>) attributes {dimension_semantics = [#tpu.dimension_semantics<parallel>], iteration_bounds = array<i64: 2>, scalar_prefetch = 0 : i64, scratch_operands = 0 : i64, tpu.core_type = #tpu.core_type<tc>, window_params = [{transform_indices = @transform_0, window_bounds = array<i64: 1, 1, 1024>}, {pipeline_mode = #tpu.pipeline_mode<synchronous>, transform_indices = @transform_1, window_bounds = array<i64: 1024, 10>}, {pipeline_mode = #tpu.pipeline_mode<synchronous>, transform_indices = @transform_2, window_bounds = array<i64: 10, 1024>}, {pipeline_mode = #tpu.pipeline_mode<synchronous>, transform_indices = @transform_3, window_bounds = array<i64: 1, 10>}, {pipeline_mode = #tpu.pipeline_mode<synchronous>, transform_indices = @transform_4, window_bounds = array<i64: 50, 1>}, {transform_indices = @transform_5, window_bounds = array<i64: 1, 1, 1024>}, {transform_indices = @transform_6, window_bounds = array<i64: 1, 1, 10>}]} {
    %c0 = arith.constant 0 : index
    %c0_0 = arith.constant 0 : index
    %c0_1 = arith.constant 0 : index
    %0 = vector.load %arg1[%c0, %c0_0, %c0_1] : memref<1x1x1024xf32, #tpu.memory_space<vmem>>, vector<1x1x1024xf32>
    %1 = vector.shape_cast %0 : vector<1x1x1024xf32> to vector<1x1024xf32>
    %c0_2 = arith.constant 0 : index
    %c0_3 = arith.constant 0 : index
    %2 = vector.load %arg2[%c0_2, %c0_3] : memref<1024x10xf32, #tpu.memory_space<vmem>>, vector<1024x10xf32>
    %c0_4 = arith.constant 0 : index
    %c0_5 = arith.constant 0 : index
    %3 = vector.load %arg3[%c0_4, %c0_5] : memref<10x1024xf32, #tpu.memory_space<vmem>>, vector<10x1024xf32>
    %c0_6 = arith.constant 0 : index
    %c0_7 = arith.constant 0 : index
    %4 = vector.load %arg4[%c0_6, %c0_7] : memref<1x10xf32, #tpu.memory_space<vmem>>, vector<1x10xf32>
    %c0_8 = arith.constant 0 : index
    %c0_9 = arith.constant 0 : index
    %5 = vector.load %arg5[%c0_8, %c0_9] : memref<50x1xf32, #tpu.memory_space<vmem>>, vector<50x1xf32>
    %cst = arith.constant dense<0.000000e+00> : vector<1x10xf32>
    %6 = tpu.matmul %1, %2, %cst {dimension_numbers = #tpu.dot_dimension_numbers<[1], [0], [0], [1], [0, 0, 1, 1], [], []>} : vector<1x1024xf32>, vector<1024x10xf32>, vector<1x10xf32> -> vector<1x10xf32>
    %7 = vector.broadcast %5 : vector<50x1xf32> to vector<50x10xf32>
    %8 = vector.broadcast %6 : vector<1x10xf32> to vector<50x10xf32>
    %9 = arith.mulf %7, %8 : vector<50x10xf32>
    %10 = vector.broadcast %4 : vector<1x10xf32> to vector<50x10xf32>
    %11 = arith.addf %9, %10 : vector<50x10xf32>
    %cst_10 = arith.constant dense<0xFF800000> : vector<50xf32>
    %12 = vector.multi_reduction <maximumf>, %11, %cst_10 [1] : vector<50x10xf32> to vector<50xf32>
    %13 = vector.shape_cast %12 : vector<50xf32> to vector<50x1xf32>
    %14 = vector.broadcast %13 : vector<50x1xf32> to vector<50x10xf32>
    %15 = arith.subf %11, %14 : vector<50x10xf32>
    %16 = math.exp %15 : vector<50x10xf32>
    %cst_11 = arith.constant dense<0.000000e+00> : vector<50xf32>
    %17 = vector.multi_reduction <add>, %16, %cst_11 [1] : vector<50x10xf32> to vector<50xf32>
    %18 = vector.shape_cast %17 : vector<50xf32> to vector<50x1xf32>
    %19 = vector.extract_strided_slice %16 {offsets = [49, 0], sizes = [1, 10], strides = [1, 1]} : vector<50x10xf32> to vector<1x10xf32>
    %20 = vector.extract_strided_slice %18 {offsets = [49, 0], sizes = [1, 1], strides = [1, 1]} : vector<50x1xf32> to vector<1x1xf32>
    %21 = vector.broadcast %20 : vector<1x1xf32> to vector<1x10xf32>
    %22 = arith.divf %19, %21 : vector<1x10xf32>
    %c0_12 = arith.constant 0 : index
    %c0_13 = arith.constant 0 : index
    %c0_14 = arith.constant 0 : index
    %23 = vector.load %arg7[%c0_12, %c0_13, %c0_14] : memref<1x1x10xf32, #tpu.memory_space<vmem>>, vector<1x1x10xf32>
    %24 = vector.shape_cast %23 : vector<1x1x10xf32> to vector<1x10xf32>
    %25 = vector.shape_cast %22 : vector<1x10xf32> to vector<1x1x10xf32>
    tpu.vector_store %arg7[%c0_12, %c0_13, %c0_14], %25 {strides = array<i32>} : memref<1x1x10xf32, #tpu.memory_space<vmem>>, vector<1x1x10xf32>,
    %26 = vector.extract_strided_slice %11 {offsets = [49, 0], sizes = [1, 10], strides = [1, 1]} : vector<50x10xf32> to vector<1x10xf32>
    %27 = vector.extract_strided_slice %13 {offsets = [49, 0], sizes = [1, 1], strides = [1, 1]} : vector<50x1xf32> to vector<1x1xf32>
    %28 = tpu.iota {dimensions = array<i32: 1>} : vector<1x10xi32>
    %29 = vector.broadcast %27 : vector<1x1xf32> to vector<1x10xf32>
    %30 = arith.cmpf oeq, %26, %29 : vector<1x10xf32>
    %c10_i32 = arith.constant 10 : i32
    %31 = vector.broadcast %c10_i32 : i32 to vector<1x10xi32>
    %32 = arith.select %30, %28, %31 : vector<1x10xi1>, vector<1x10xi32>
    %cst_15 = arith.constant dense<2147483647> : vector<1xi32>
    %33 = vector.multi_reduction <minsi>, %32, %cst_15 [1] : vector<1x10xi32> to vector<1xi32>
    %34 = vector.shape_cast %33 : vector<1xi32> to vector<1x1xi32>
    %35 = vector.broadcast %34 : vector<1x1xi32> to vector<1x10xi32>
    %36 = arith.cmpi eq, %28, %35 : vector<1x10xi32>
    %37 = arith.extui %36 : vector<1x10xi1> to vector<1x10xi32>
    %38 = arith.sitofp %37 : vector<1x10xi32> to vector<1x10xf32>
    %39 = tpu.reciprocal %18 {approx = true} : vector<50x1xf32> -> vector<50x1xf32>
    %40 = vector.broadcast %39 : vector<50x1xf32> to vector<50x10xf32>
    %41 = arith.mulf %16, %40 : vector<50x10xf32>
    %42 = vector.broadcast %38 : vector<1x10xf32> to vector<50x10xf32>
    %43 = arith.mulf %41, %42 : vector<50x10xf32>
    %cst_16 = arith.constant dense<0.000000e+00> : vector<50xf32>
    %44 = vector.multi_reduction <add>, %43, %cst_16 [1] : vector<50x10xf32> to vector<50xf32>
    %45 = vector.shape_cast %44 : vector<50xf32> to vector<50x1xf32>
    %46 = arith.mulf %5, %45 : vector<50x1xf32>
    %47 = vector.broadcast %38 : vector<1x10xf32> to vector<50x10xf32>
    %48 = arith.subf %47, %41 : vector<50x10xf32>
    %49 = vector.broadcast %46 : vector<50x1xf32> to vector<50x10xf32>
    %50 = arith.mulf %49, %48 : vector<50x10xf32>
    %cst_17 = arith.constant dense<0.000000e+00> : vector<10xf32>
    %51 = vector.multi_reduction <add>, %50, %cst_17 [0] : vector<50x10xf32> to vector<10xf32>
    %52 = vector.shape_cast %51 : vector<10xf32> to vector<1x10xf32>
    %cst_18 = arith.constant 2.000000e-02 : f32
    %53 = vector.broadcast %cst_18 : f32 to vector<1x10xf32>
    %54 = arith.mulf %52, %53 : vector<1x10xf32>
    %cst_19 = arith.constant dense<0.000000e+00> : vector<1x1024xf32>
    %55 = tpu.matmul %54, %3, %cst_19 {dimension_numbers = #tpu.dot_dimension_numbers<[1], [0], [0], [1], [0, 0, 1, 1], [], []>} : vector<1x10xf32>, vector<10x1024xf32>, vector<1x1024xf32> -> vector<1x1024xf32>
    %56 = arith.mulf %55, %1 : vector<1x1024xf32>
    %c0_20 = arith.constant 0 : index
    %c0_21 = arith.constant 0 : index
    %c0_22 = arith.constant 0 : index
    %57 = vector.load %arg6[%c0_20, %c0_21, %c0_22] : memref<1x1x1024xf32, #tpu.memory_space<vmem>>, vector<1x1x1024xf32>
    %58 = vector.shape_cast %57 : vector<1x1x1024xf32> to vector<1x1024xf32>
    %59 = vector.shape_cast %56 : vector<1x1024xf32> to vector<1x1x1024xf32>
    tpu.vector_store %arg6[%c0_20, %c0_21, %c0_22], %59 {strides = array<i32>} : memref<1x1x1024xf32, #tpu.memory_space<vmem>>, vector<1x1x1024xf32>,
    return
  }
  func.func @transform_0(%arg0: i32) -> (i32, i32, i32) {
    %c0_i32 = arith.constant 0 : i32
    %c0_i32_0 = arith.constant 0 : i32
    %c0_i32_1 = arith.constant 0 : i32
    return %arg0, %c0_i32, %c0_i32_0 : i32, i32, i32
  }
  func.func @transform_1(%arg0: i32) -> (i32, i32) {
    %c0_i32 = arith.constant 0 : i32
    %c0_i32_0 = arith.constant 0 : i32
    %c0_i32_1 = arith.constant 0 : i32
    return %c0_i32, %c0_i32_0 : i32, i32
  }
  func.func @transform_2(%arg0: i32) -> (i32, i32) {
    %c0_i32 = arith.constant 0 : i32
    %c0_i32_0 = arith.constant 0 : i32
    %c0_i32_1 = arith.constant 0 : i32
    return %c0_i32, %c0_i32_0 : i32, i32
  }
  func.func @transform_3(%arg0: i32) -> (i32, i32) {
    %c0_i32 = arith.constant 0 : i32
    %c0_i32_0 = arith.constant 0 : i32
    %c0_i32_1 = arith.constant 0 : i32
    return %c0_i32, %c0_i32_0 : i32, i32
  }
  func.func @transform_4(%arg0: i32) -> (i32, i32) {
    %c0_i32 = arith.constant 0 : i32
    %c0_i32_0 = arith.constant 0 : i32
    %c0_i32_1 = arith.constant 0 : i32
    return %c0_i32, %c0_i32_0 : i32, i32
  }
  func.func @transform_5(%arg0: i32) -> (i32, i32, i32) {
    %c0_i32 = arith.constant 0 : i32
    %c0_i32_0 = arith.constant 0 : i32
    %c0_i32_1 = arith.constant 0 : i32
    return %arg0, %c0_i32, %c0_i32_0 : i32, i32, i32
  }
  func.func @transform_6(%arg0: i32) -> (i32, i32, i32) {
    %c0_i32 = arith.constant 0 : i32
    %c0_i32_0 = arith.constant 0 : i32
    %c0_i32_1 = arith.constant 0 : i32
    return %arg0, %c0_i32, %c0_i32_0 : i32, i32, i32
  }
}

</mosaic_0001>

<bundles_post_ra>
// kernel: tpu_custom_call.1
= control target key start
LH: loop header
LB: loop body
LE: loop exit
PB: predicated region body
PF: predicated region fallthrough
CT: control target
= control target key end

     0   :  { %12 = vsyncpa [#allocation3], 0  ;;  %s2219_s0 = inlined_call_operand.vmem [shape: f32[2,1,1024], index: 0, kind: input, shape index: {}]   ;;  %s2220_s1 = inlined_call_operand.vmem [shape: f32[1024,10], index: 1, kind: input, shape index: {}]   ;;  %s2221_s2 = inlined_call_operand.vmem [shape: f32[10,1024], index: 2, kind: input, shape index: {}]   ;;  %s2222_s3 = inlined_call_operand.vmem [shape: f32[1,10], index: 3, kind: input, shape index: {}]   ;;  %s2223_s4 = inlined_call_operand.vmem [shape: f32[50,1], index: 4, kind: input, shape index: {}]   ;;  %s2224_s5 = inlined_call_operand.hbm [shape: f32[2,1,1024], index: 5, kind: output, shape index: {0}]   ;;  %s2225_s6 = inlined_call_operand.hbm [shape: f32[2,1,10], index: 6, kind: output, shape index: {1}]  }
   0x1   :  { %14 = vsyncpa [#allocation3 + $0x1], 0 }
   0x2   :  { %15 = vsyncpa [#allocation5], 0 }
   0x3   :  { %17 = vsyncpa [#allocation5 + $0x1], 0  ;;  %s1447_s21 = smov 0   ;;  %s1449_s22 = smov 0  }
   0x4   :  { %s1451_s23 = smov 0   ;;  %s1453_s24 = smov 0  }
   0x5 LB: > { %s1468_s25 = sadd.s32 4294967295, %s1408_s24   ;;  %s1209_s26 = sadd.s32 4294967294, %s1408_s24   ;;  %s1408_s24 = sphi %s1453_s24, %s2231_s24   ;;  %s1404_s23 = sphi %s1451_s23, %s2230_s23   ;;  %s1400_s22 = sphi %s1449_s22, %s2229_s22   ;;  %s1396_s21 = sphi %s1447_s21, %s2228_s21  }
   0x6   : > { %s1472_s27 = sadd.s32 1, %s1408_s24   ;;  %s140_s28 = sadd.s32 1, %s1404_s23 }
   0x7   : > { %s137_s29 = ssub.s32 %s1408_s24, %s1472_s27  ;;  %p150_p0 = scmp.ne.s32.totalorder %s1404_s23, %s1400_s22 }
   0x8   : > { %p138_p1 = scmp.eq.s32.totalorder %s137_s29, 0  ;;  %p151_p2 = scmp.eq.s32.totalorder %s1468_s25, 1 }
   0x9   : > { %p156_p3 = scmp.ne.s32.totalorder %s1400_s22, %s1396_s21  ;;  %p157_p4 = scmp.eq.s32.totalorder %s1209_s26, 1 }
   0xa   : > { %s1483_s30 = scalar_select %p138_p1, %s1404_s23, %s140_s28  }
   0xb   : > { %p1485_p5 = por %p151_p2, %p150_p0  ;;  %p1489_p6 = por %p157_p4, %p156_p3 }
   0xc   : > { %p1212_p7 = scmp.ge.s32.totalorder %s1408_s24, 1  ;;  %p220_p8 = scmp.lt.s32.totalorder %s1408_s24, 3 }
   0xe   : > { %p221_p9 = pnand %p1212_p7, %p220_p8 }
   0xf   : > { %p253_p10 = scmp.lt.s32.totalorder (!%p221_p9), %s1468_s25, 1  ;;  %s2000_s16 = sand.u32 (!%p221_p9), 1, %s1400_s22  }
  0x10   : > { %224 = sbr.rel (%p221_p9) target bundleno = 1018 (0x3fa), region = 40  ;;  %s252_s17 = scalar_lea.vmem (!%p221_p9), [#allocation4], %s2000_s16 }
  0x11   : > { %s1117_s14 = scalar_lea.hbm (!%p221_p9), %s2225_s6, %s1468_s25  ;;  %s1334_s9 = scalar_lea.hbm (!%p221_p9), %s2225_s6, 2 }
  0x12   : > { %s1121_s15 = sshll.u32 (!%p221_p9), %s1117_s14, 4  ;;  %s1122_s15 = int_to_ptr.hbm [resolvable:$true] %s1121_s15 }
  0x15   : > { %v273_v0 = vld [vmem:[%s2220_s1 + $0x78] sm:$0xff]  ;;  %v272_v2 = vld [vmem:[%s2220_s1 + $0x70] sm:$0xff]  ;;  %v271_v6 = vld [vmem:[%s2220_s1 + $0x68] sm:$0xff]  ;;  %s1739_s19 = scalar_select %p253_p10, %s1468_s25, 1  ;;  %vm659_vm0 = vcmask 74752   ;;  %vm640_vm1 = vcmask 80896  }
  0x16   : > { %v305_v1 = vld [vmem:[%s2220_s1 + $0x178] sm:$0xff]  ;;  %427 = vmatpush.msra.mxu0 %v273_v0  ;;  %v304_v4 = vld [vmem:[%s2220_s1 + $0x170] sm:$0xff]  ;;  %v303_v8 = vld [vmem:[%s2220_s1 + $0x168] sm:$0xff]  ;;  %vm720_vm2 = vcmask 74753   ;;  %vm866_vm10 = vcmask 1041408  }
  0x17   : > { %467 = vmatpush.msra.mxu2 %v305_v1  ;;  %v289_v3 = vld [vmem:[%s2220_s1 + $0xf8] sm:$0xff]  ;;  %v288_v7 = vld [vmem:[%s2220_s1 + $0xf0] sm:$0xff]  ;;  %v287_v10 = vld [vmem:[%s2220_s1 + $0xe8] sm:$0xff]  ;;  %s1214_s28 = sshll.u32 %s1739_s19, 3  ;;  %s1095_s19 = scalar_lea.sflag [#allocation5], %s2000_s16 }
  0x18   : > { %v321_v5 = vld [vmem:[%s2220_s1 + $0x1f8] sm:$0xff]  ;;  %447 = vmatpush.msra.mxu1 %v289_v3  ;;  %428 = vmatpush.msra.mxu0 %v272_v2  ;;  %v320_v9 = vld [vmem:[%s2220_s1 + $0x1f0] sm:$0xff]  ;;  %v270_v11 = vld [vmem:[%s2220_s1 + $0x60] sm:$0xff]  ;;  %s256_s29 = scalar_lea.vmem %s2219_s0, %s1214_s28  ;;  %s1328_s28 = sshra.s32 %s1122_s15, 4  ;;  %s1329_s28 = int_to_ptr.hbm [resolvable:$true] %s1328_s28 }
  0x19   : > { %487 = vmatpush.msra.mxu3 %v321_v5  ;;  %468 = vmatpush.msra.mxu2 %v304_v4  ;;  %v302_v12 = vld [vmem:[%s2220_s1 + $0x160] sm:$0xff]  ;;  %v319_v13 = vld [vmem:[%s2220_s1 + $0x1e8] sm:$0xff]  ;;  %v269_v16 = vld [vmem:[%s2220_s1 + $0x58] sm:$0xff]  ;;  %s1330_s18 = scalar_lea.hbm %s1329_s28, 1  ;;  %p1335_p0 = scmp.lt.s32.totalorder %s1329_s28, %s2225_s6 }
  0x1a   : > { %448 = vmatpush.msra.mxu1 %v288_v7  ;;  %429 = vmatpush.msra.mxu0 %v271_v6  ;;  %v286_v14 = vld [vmem:[%s2220_s1 + $0xe0] sm:$0xff]  ;;  %v301_v17 = vld [vmem:[%s2220_s1 + $0x158] sm:$0xff]  ;;  %v268_v20 = vld [vmem:[%s2220_s1 + $0x50] sm:$0xff]  ;;  %p1331_p11 = scmp.ne.s32.totalorder %s1329_s28, %s1330_s18  ;;  %p1336_p1 = scmp.lt.s32.totalorder %s1334_s9, %s1330_s18 }
  0x1b   : > { %488 = vmatpush.msra.mxu3 %v320_v9  ;;  %469 = vmatpush.msra.mxu2 %v303_v8  ;;  %v318_v15 = vld [vmem:[%s2220_s1 + $0x1e0] sm:$0xff]  ;;  %v285_v18 = vld [vmem:[%s2220_s1 + $0xd8] sm:$0xff]  ;;  %v300_v21 = vld [vmem:[%s2220_s1 + $0x150] sm:$0xff] }
  0x1c   : > { %449 = vmatpush.msra.mxu1 %v287_v10  ;;  %430 = vmatpush.msra.mxu0 %v270_v11  ;;  %v317_v19 = vld [vmem:[%s2220_s1 + $0x1d8] sm:$0xff]  ;;  %v284_v22 = vld [vmem:[%s2220_s1 + $0xd0] sm:$0xff]  ;;  %v267_v24 = vld [vmem:[%s2220_s1 + $0x48] sm:$0xff]  ;;  %p1332_p12 = pnand %p1331_p11, %p1485_p5  ;;  %p1337_p2 = por %p1336_p1, %p1335_p0 }
  0x1d   : > { %489 = vmatpush.msra.mxu3 %v319_v13  ;;  %470 = vmatpush.msra.mxu2 %v302_v12  ;;  %v316_v23 = vld [vmem:[%s2220_s1 + $0x1d0] sm:$0xff]  ;;  %v299_v25 = vld [vmem:[%s2220_s1 + $0x148] sm:$0xff]  ;;  %v266_v28 = vld [vmem:[%s2220_s1 + $0x40] sm:$0xff] }
  0x1e   : > { %450 = vmatpush.msra.mxu1 %v286_v14  ;;  %431 = vmatpush.msra.mxu0 %v269_v16  ;;  %v283_v26 = vld [vmem:[%s2220_s1 + $0xc8] sm:$0xff]  ;;  %v298_v29 = vld [vmem:[%s2220_s1 + $0x140] sm:$0xff]  ;;  %v265_v32 = vld [vmem:[%s2220_s1 + $0x38] sm:$0xff]  ;;  %p1333_p13 = pneg %p1332_p12 }
  0x1f   : > { %490 = vmatpush.msra.mxu3 %v318_v15  ;;  %471 = vmatpush.msra.mxu2 %v301_v17  ;;  %v315_v27 = vld [vmem:[%s2220_s1 + $0x1c8] sm:$0xff]  ;;  %v282_v30 = vld [vmem:[%s2220_s1 + $0xc0] sm:$0xff]  ;;  %v297_v33 = vld [vmem:[%s2220_s1 + $0x138] sm:$0xff] }
  0x20   : > { %451 = vmatpush.msra.mxu1 %v285_v18  ;;  %432 = vmatpush.msra.mxu0 %v268_v20  ;;  %v314_v31 = vld [vmem:[%s2220_s1 + $0x1c0] sm:$0xff]  ;;  %v281_v34 = vld [vmem:[%s2220_s1 + $0xb8] sm:$0xff]  ;;  %v264_v36 = vld [vmem:[%s2220_s1 + $0x30] sm:$0xff]  ;;  %p1338_p3 = pnand %p1337_p2, %p1333_p13 }
  0x21   : > { %491 = vmatpush.msra.mxu3 %v317_v19  ;;  %472 = vmatpush.msra.mxu2 %v300_v21  ;;  %v313_v35 = vld [vmem:[%s2220_s1 + $0x1b8] sm:$0xff]  ;;  %v296_v37 = vld [vmem:[%s2220_s1 + $0x130] sm:$0xff]  ;;  %v263_v40 = vld [vmem:[%s2220_s1 + $0x28] sm:$0xff] }
  0x22   : > { %452 = vmatpush.msra.mxu1 %v284_v22  ;;  %433 = vmatpush.msra.mxu0 %v267_v24  ;;  %v280_v38 = vld [vmem:[%s2220_s1 + $0xb0] sm:$0xff]  ;;  %v295_v41 = vld [vmem:[%s2220_s1 + $0x128] sm:$0xff]  ;;  %v262_v44 = vld [vmem:[%s2220_s1 + $0x20] sm:$0xff] }
  0x23   : > { %492 = vmatpush.msra.mxu3 %v316_v23  ;;  %473 = vmatpush.msra.mxu2 %v299_v25  ;;  %v312_v39 = vld [vmem:[%s2220_s1 + $0x1b0] sm:$0xff]  ;;  %v279_v42 = vld [vmem:[%s2220_s1 + $0xa8] sm:$0xff]  ;;  %v294_v45 = vld [vmem:[%s2220_s1 + $0x120] sm:$0xff] }
  0x24   : > { %453 = vmatpush.msra.mxu1 %v283_v26  ;;  %434 = vmatpush.msra.mxu0 %v266_v28  ;;  %v311_v43 = vld [vmem:[%s2220_s1 + $0x1a8] sm:$0xff]  ;;  %v278_v46 = vld [vmem:[%s2220_s1 + $0xa0] sm:$0xff]  ;;  %v261_v48 = vld [vmem:[%s2220_s1 + $0x18] sm:$0xff] }
  0x25   : > { %493 = vmatpush.msra.mxu3 %v315_v27  ;;  %474 = vmatpush.msra.mxu2 %v298_v29  ;;  %v310_v47 = vld [vmem:[%s2220_s1 + $0x1a0] sm:$0xff]  ;;  %v293_v49 = vld [vmem:[%s2220_s1 + $0x118] sm:$0xff]  ;;  %v260_v52 = vld [vmem:[%s2220_s1 + $0x10] sm:$0xff] }
  0x26   : > { %454 = vmatpush.msra.mxu1 %v282_v30  ;;  %435 = vmatpush.msra.mxu0 %v265_v32  ;;  %v277_v50 = vld [vmem:[%s2220_s1 + $0x98] sm:$0xff]  ;;  %v292_v53 = vld [vmem:[%s2220_s1 + $0x110] sm:$0xff]  ;;  %v259_v56 = vld [vmem:[%s2220_s1 + $0x8] sm:$0xff] }
  0x27   : > { %494 = vmatpush.msra.mxu3 %v314_v31  ;;  %475 = vmatpush.msra.mxu2 %v297_v33  ;;  %v309_v51 = vld [vmem:[%s2220_s1 + $0x198] sm:$0xff]  ;;  %v276_v54 = vld [vmem:[%s2220_s1 + $0x90] sm:$0xff]  ;;  %v291_v57 = vld [vmem:[%s2220_s1 + $0x108] sm:$0xff] }
  0x28   : > { %455 = vmatpush.msra.mxu1 %v281_v34  ;;  %436 = vmatpush.msra.mxu0 %v264_v36  ;;  %v308_v55 = vld [vmem:[%s2220_s1 + $0x190] sm:$0xff]  ;;  %v275_v58 = vld [vmem:[%s2220_s1 + $0x88] sm:$0xff]  ;;  %v258_v60 = vld [vmem:[%s2220_s1] sm:$0xff] }
  0x29   : > { %495 = vmatpush.msra.mxu3 %v313_v35  ;;  %476 = vmatpush.msra.mxu2 %v296_v37  ;;  %v307_v59 = vld [vmem:[%s2220_s1 + $0x188] sm:$0xff]  ;;  %v290_v61 = vld [vmem:[%s2220_s1 + $0x100] sm:$0xff]  ;;  %v337_v62 = vld [vmem:[%s2220_s1 + $0x278] sm:$0xff] }
  0x2a   : > { %456 = vmatpush.msra.mxu1 %v280_v38  ;;  %437 = vmatpush.msra.mxu0 %v263_v40  ;;  %v369_v63 = vld [vmem:[%s2220_s1 + $0x378] sm:$0xff]  ;;  %v274_v0 = vld [vmem:[%s2220_s1 + $0x80] sm:$0xff]  ;;  %v336_v2 = vld [vmem:[%s2220_s1 + $0x270] sm:$0xff] }
  0x2b   : > { %496 = vmatpush.msra.mxu3 %v312_v39  ;;  %477 = vmatpush.msra.mxu2 %v295_v41  ;;  %v306_v1 = vld [vmem:[%s2220_s1 + $0x180] sm:$0xff]  ;;  %v353_v3 = vld [vmem:[%s2220_s1 + $0x2f8] sm:$0xff]  ;;  %v368_v4 = vld [vmem:[%s2220_s1 + $0x370] sm:$0xff] }
  0x2c   : > { %457 = vmatpush.msra.mxu1 %v279_v42  ;;  %438 = vmatpush.msra.mxu0 %v262_v44  ;;  %v385_v5 = vld [vmem:[%s2220_s1 + $0x3f8] sm:$0xff]  ;;  %v335_v6 = vld [vmem:[%s2220_s1 + $0x268] sm:$0xff]  ;;  %v352_v7 = vld [vmem:[%s2220_s1 + $0x2f0] sm:$0xff] }
  0x2d   : > { %497 = vmatpush.msra.mxu3 %v311_v43  ;;  %478 = vmatpush.msra.mxu2 %v294_v45  ;;  %v367_v8 = vld [vmem:[%s2220_s1 + $0x368] sm:$0xff]  ;;  %v384_v9 = vld [vmem:[%s2220_s1 + $0x3f0] sm:$0xff]  ;;  %v334_v10 = vld [vmem:[%s2220_s1 + $0x260] sm:$0xff] }
  0x2e   : > { %458 = vmatpush.msra.mxu1 %v278_v46  ;;  %439 = vmatpush.msra.mxu0 %v261_v48  ;;  %v351_v11 = vld [vmem:[%s2220_s1 + $0x2e8] sm:$0xff]  ;;  %v366_v12 = vld [vmem:[%s2220_s1 + $0x360] sm:$0xff]  ;;  %v333_v14 = vld [vmem:[%s2220_s1 + $0x258] sm:$0xff] }
  0x2f   : > { %498 = vmatpush.msra.mxu3 %v310_v47  ;;  %479 = vmatpush.msra.mxu2 %v293_v49  ;;  %v383_v13 = vld [vmem:[%s2220_s1 + $0x3e8] sm:$0xff]  ;;  %v350_v15 = vld [vmem:[%s2220_s1 + $0x2e0] sm:$0xff]  ;;  %v365_v16 = vld [vmem:[%s2220_s1 + $0x358] sm:$0xff] }
  0x30   : > { %459 = vmatpush.msra.mxu1 %v277_v50  ;;  %440 = vmatpush.msra.mxu0 %v260_v52  ;;  %v382_v17 = vld [vmem:[%s2220_s1 + $0x3e0] sm:$0xff]  ;;  %v332_v18 = vld [vmem:[%s2220_s1 + $0x250] sm:$0xff]  ;;  %v349_v19 = vld [vmem:[%s2220_s1 + $0x2d8] sm:$0xff] }
  0x31   : > { %499 = vmatpush.msra.mxu3 %v309_v51  ;;  %480 = vmatpush.msra.mxu2 %v292_v53  ;;  %v364_v20 = vld [vmem:[%s2220_s1 + $0x350] sm:$0xff]  ;;  %v381_v21 = vld [vmem:[%s2220_s1 + $0x3d8] sm:$0xff]  ;;  %v331_v22 = vld [vmem:[%s2220_s1 + $0x248] sm:$0xff] }
  0x32   : > { %460 = vmatpush.msra.mxu1 %v276_v54  ;;  %441 = vmatpush.msra.mxu0 %v259_v56  ;;  %v348_v23 = vld [vmem:[%s2220_s1 + $0x2d0] sm:$0xff]  ;;  %v363_v24 = vld [vmem:[%s2220_s1 + $0x348] sm:$0xff]  ;;  %v330_v26 = vld [vmem:[%s2220_s1 + $0x240] sm:$0xff] }
  0x33   : > { %500 = vmatpush.msra.mxu3 %v308_v55  ;;  %481 = vmatpush.msra.mxu2 %v291_v57  ;;  %v380_v25 = vld [vmem:[%s2220_s1 + $0x3d0] sm:$0xff]  ;;  %v347_v27 = vld [vmem:[%s2220_s1 + $0x2c8] sm:$0xff]  ;;  %v362_v28 = vld [vmem:[%s2220_s1 + $0x340] sm:$0xff] }
  0x34   : > { %461 = vmatpush.msra.mxu1 %v275_v58  ;;  %442 = vmatpush.msra.mxu0 %v258_v60  ;;  %v379_v29 = vld [vmem:[%s2220_s1 + $0x3c8] sm:$0xff]  ;;  %v329_v30 = vld [vmem:[%s2220_s1 + $0x238] sm:$0xff]  ;;  %v346_v31 = vld [vmem:[%s2220_s1 + $0x2c0] sm:$0xff] }
  0x35   : > { %501 = vmatpush.msra.mxu3 %v307_v59  ;;  %482 = vmatpush.msra.mxu2 %v290_v61  ;;  %v361_v32 = vld [vmem:[%s2220_s1 + $0x338] sm:$0xff]  ;;  %v378_v33 = vld [vmem:[%s2220_s1 + $0x3c0] sm:$0xff]  ;;  %v328_v34 = vld [vmem:[%s2220_s1 + $0x230] sm:$0xff] }
  0x36   : > { %507 = vmatpush.msrb.mxu0 %v337_v62  ;;  %462 = vmatpush.msra.mxu1 %v274_v0  ;;  %v345_v35 = vld [vmem:[%s2220_s1 + $0x2b8] sm:$0xff]  ;;  %v1805_v36 = vld [vmem:[%s256_s29] sm:$0xff]  ;;  %v360_v37 = vld [vmem:[%s2220_s1 + $0x330] sm:$0xff]  ;;  %s1119_s29 = sshll.u32 %s252_s17, 4  ;;  %s1120_s29 = int_to_ptr.vmem [resolvable:$true] %s1119_s29 }
  0x37   : > { %547 = vmatpush.msrb.mxu2 %v369_v63  ;;  %502 = vmatpush.msra.mxu3 %v306_v1  ;;  %v377_v38 = vld [vmem:[%s2220_s1 + $0x3b8] sm:$0xff]  ;;  %v327_v39 = vld [vmem:[%s2220_s1 + $0x228] sm:$0xff]  ;;  %v344_v40 = vld [vmem:[%s2220_s1 + $0x2b0] sm:$0xff]  ;;  %v413_v43 = vperm.slane %v1805_v36, 2  ;;  %v411_v47 = vperm.slane %v1805_v36, 0  ;;  %v414_v49 = vperm.slane %v1805_v36, 3 }
  0x38   : > { %508 = vmatpush.msrb.mxu0 %v336_v2  ;;  %527 = vmatpush.msrb.mxu1 %v353_v3  ;;  %v359_v41 = vld [vmem:[%s2220_s1 + $0x328] sm:$0xff]  ;;  %v376_v42 = vld [vmem:[%s2220_s1 + $0x3b0] sm:$0xff]  ;;  %v326_v44 = vld [vmem:[%s2220_s1 + $0x220] sm:$0xff]  ;;  %v412_v53 = vperm.slane %v1805_v36, 1  ;;  %v415_v3 = vperm.slane %v1805_v36, 4 }
  0x39   : > { %548 = vmatpush.msrb.mxu2 %v368_v4  ;;  %567 = vmatpush.msrb.mxu3 %v385_v5  ;;  %v343_v45 = vld [vmem:[%s2220_s1 + $0x2a8] sm:$0xff]  ;;  %v358_v46 = vld [vmem:[%s2220_s1 + $0x320] sm:$0xff]  ;;  %v325_v50 = vld [vmem:[%s2220_s1 + $0x218] sm:$0xff]  ;;  %v417_v4 = vperm.slane %v1805_v36, 6 }
  0x3a   : > { %509 = vmatpush.msrb.mxu0 %v335_v6  ;;  %528 = vmatpush.msrb.mxu1 %v352_v7  ;;  %v375_v48 = vld [vmem:[%s2220_s1 + $0x3a8] sm:$0xff]  ;;  %v342_v51 = vld [vmem:[%s2220_s1 + $0x2a0] sm:$0xff]  ;;  %v357_v52 = vld [vmem:[%s2220_s1 + $0x318] sm:$0xff]  ;;  %v416_v7 = vperm.slane %v1805_v36, 5 }
  0x3b   : > { %549 = vmatpush.msrb.mxu2 %v367_v8  ;;  %568 = vmatpush.msrb.mxu3 %v384_v9  ;;  %v374_v54 = vld [vmem:[%s2220_s1 + $0x3a0] sm:$0xff]  ;;  %v324_v55 = vld [vmem:[%s2220_s1 + $0x210] sm:$0xff]  ;;  %v341_v56 = vld [vmem:[%s2220_s1 + $0x298] sm:$0xff]  ;;  %v418_v8 = vperm.slane %v1805_v36, 7 }
  0x3c   : > { %510 = vmatpush.msrb.mxu0 %v334_v10  ;;  %529 = vmatpush.msrb.mxu1 %v351_v11  ;;  %v356_v57 = vld [vmem:[%s2220_s1 + $0x310] sm:$0xff]  ;;  %v373_v58 = vld [vmem:[%s2220_s1 + $0x398] sm:$0xff]  ;;  %v323_v59 = vld [vmem:[%s2220_s1 + $0x208] sm:$0xff]  ;;  %v1410_v11 = vmov 0  }
  0x3d   : > { %550 = vmatpush.msrb.mxu2 %v366_v12  ;;  %569 = vmatpush.msrb.mxu3 %v383_v13  ;;  %v340_v60 = vld [vmem:[%s2220_s1 + $0x290] sm:$0xff]  ;;  %v355_v61 = vld [vmem:[%s2220_s1 + $0x308] sm:$0xff]  ;;  %v322_v63 = vld [vmem:[%s2220_s1 + $0x200] sm:$0xff] }
  0x3e   : > { %511 = vmatpush.msrb.mxu0 %v333_v14  ;;  %530 = vmatpush.msrb.mxu1 %v350_v15  ;;  %v372_v62 = vld [vmem:[%s2220_s1 + $0x390] sm:$0xff]  ;;  %v339_v0 = vld [vmem:[%s2220_s1 + $0x288] sm:$0xff]  ;;  %v354_v1 = vld [vmem:[%s2220_s1 + $0x300] sm:$0xff] }
  0x3f   : > { %551 = vmatpush.msrb.mxu2 %v365_v16  ;;  %570 = vmatpush.msrb.mxu3 %v382_v17  ;;  %v371_v2 = vld [vmem:[%s2220_s1 + $0x388] sm:$0xff]  ;;  %v338_v5 = vld [vmem:[%s2220_s1 + $0x280] sm:$0xff]  ;;  %v1914_v9 = vld [vmem:[%s2223_s4 + $0x30] sm:$0x3] }
  0x40   : > { %512 = vmatpush.msrb.mxu0 %v332_v18  ;;  %531 = vmatpush.msrb.mxu1 %v349_v19  ;;  %v370_v6 = vld [vmem:[%s2220_s1 + $0x380] sm:$0xff]  ;;  %v1919_v10 = vld [vmem:[%s2223_s4 + $0x8] sm:$0xff]  ;;  %v1928_v12 = vld [vmem:[%s2223_s4 + $0x18] sm:$0xff] }
  0x41   : > { %552 = vmatpush.msrb.mxu2 %v364_v20  ;;  %571 = vmatpush.msrb.mxu3 %v381_v21  ;;  %v1936_v13 = vld [vmem:[%s2223_s4] sm:$0xff]  ;;  %v1941_v14 = vld [vmem:[%s2223_s4 + $0x10] sm:$0xff]  ;;  %v1954_v16 = vld [vmem:[%s2223_s4 + $0x28] sm:$0xff] }
  0x42   : > { %513 = vmatpush.msrb.mxu0 %v331_v22  ;;  %532 = vmatpush.msrb.mxu1 %v348_v23  ;;  %v1946_v15 = vld [vmem:[%s2223_s4 + $0x20] sm:$0xff] }
  0x43   : > { %553 = vmatpush.msrb.mxu2 %v363_v24  ;;  %572 = vmatpush.msrb.mxu3 %v380_v25 }
  0x44   : > { %514 = vmatpush.msrb.mxu0 %v330_v26  ;;  %533 = vmatpush.msrb.mxu1 %v347_v27 }
  0x45   : > { %554 = vmatpush.msrb.mxu2 %v362_v28  ;;  %573 = vmatpush.msrb.mxu3 %v379_v29 }
  0x46   : > { %515 = vmatpush.msrb.mxu0 %v329_v30  ;;  %534 = vmatpush.msrb.mxu1 %v346_v31 }
  0x47   : > { %555 = vmatpush.msrb.mxu2 %v361_v32  ;;  %574 = vmatpush.msrb.mxu3 %v378_v33 }
  0x48   : > { %516 = vmatpush.msrb.mxu0 %v328_v34  ;;  %535 = vmatpush.msrb.mxu1 %v345_v35 }
  0x49   : > { %556 = vmatpush.msrb.mxu2 %v360_v37  ;;  %575 = vmatpush.msrb.mxu3 %v377_v38  ;;  %v1285_v37 = vld [vmem:[%s2222_s3] ss:$0 sm:$0xff] }
  0x4a   : > { %517 = vmatpush.msrb.mxu0 %v327_v39  ;;  %536 = vmatpush.msrb.mxu1 %v344_v40 }
  0x4b   : > { %557 = vmatpush.msrb.mxu2 %v359_v41  ;;  %576 = vmatpush.msrb.mxu3 %v376_v42 }
  0x4c   : > { %483 = vmatmul.f32.vlgmr.msra.gmra.mxu2 %v413_v43  ;;  %518 = vmatpush.msrb.mxu0 %v326_v44 }
  0x4d   : > { %537 = vmatpush.msrb.mxu1 %v343_v45  ;;  %558 = vmatpush.msrb.mxu2 %v358_v46 }
  0x4e   : > { %577 = vmatpush.msrb.mxu3 %v375_v48  ;;  %443 = vmatmul.f32.vlgmr.msra.gmra.mxu0 %v411_v47 }
  0x4f   : > { %503 = vmatmul.f32.vlgmr.msra.gmra.mxu3 %v414_v49  ;;  %519 = vmatpush.msrb.mxu0 %v325_v50 }
  0x50   : > { %538 = vmatpush.msrb.mxu1 %v342_v51  ;;  %559 = vmatpush.msrb.mxu2 %v357_v52 }
  0x51   : > { %578 = vmatpush.msrb.mxu3 %v374_v54  ;;  %463 = vmatmul.f32.vlgmr.msra.gmra.mxu1 %v412_v53 }
  0x52   : > { %520 = vmatpush.msrb.mxu0 %v324_v55  ;;  %539 = vmatpush.msrb.mxu1 %v341_v56 }
  0x53   : > { %560 = vmatpush.msrb.mxu2 %v356_v57  ;;  %579 = vmatpush.msrb.mxu3 %v373_v58 }
  0x54   : > { %521 = vmatpush.msrb.mxu0 %v323_v59  ;;  %540 = vmatpush.msrb.mxu1 %v340_v60 }
  0x55   : > { %561 = vmatpush.msrb.mxu2 %v355_v61  ;;  %580 = vmatpush.msrb.mxu3 %v372_v62 }
  0x56   : > { %522 = vmatpush.msrb.mxu0 %v322_v63  ;;  %541 = vmatpush.msrb.mxu1 %v339_v0 }
  0x57   : > { %562 = vmatpush.msrb.mxu2 %v354_v1  ;;  %581 = vmatpush.msrb.mxu3 %v371_v2 }
  0x58   : > { %523 = vmatmul.f32.vlgmr.msrb.gmra.mxu0 %v415_v3  ;;  %563 = vmatmul.f32.vlgmr.msrb.gmra.mxu2 %v417_v4 }
  0x59   : > { %542 = vmatpush.msrb.mxu1 %v338_v5  ;;  %582 = vmatpush.msrb.mxu3 %v370_v6  ;;  %v722_v5 = vlaneseq }
  0x5a   : > { %543 = vmatmul.f32.vlgmr.msrb.gmra.mxu1 %v416_v7  ;;  %583 = vmatmul.f32.vlgmr.msrb.gmra.mxu3 %v418_v8 }
  0x5b   : > { %1282 = vset.pattern.permute.xlu0 %v1410_v11  ;;  %1283 = vset.pattern.permute.xlu1 %v1410_v11  ;;  %v1967_v6 = vand.u32 127, %v722_v5 }
  0x5c   : > { %619 = vperm.xlu0 %1282, %v1914_v9   ;;  %594 = vperm.xlu1 %1283, %v1919_v10  }
  0x5d   : > { %1284 = vset.pattern.permute.xlu2 %v1410_v11 }
  0x5e   : > { %604 = vperm.xlu2 %1284, %v1928_v12  }
  0x64   : > { %589 = vperm.xlu0 %1282, %v1936_v13   ;;  %599 = vperm.xlu1 %1283, %v1941_v14  }
  0x66   : > { %609 = vperm.xlu2 %1284, %v1946_v15  }
  0x6c   : > { %614 = vperm.xlu0 %1282, %v1954_v16  }
  0xb8   : > { %v605_v38 = vpop.permute.xlu2 %604 }
  0xc0   : > { %v610_v60 = vpop.permute.xlu2 %609 }
  0xcb   : > { %v444_v17 = vpop.f32.mrf.mxu0 }
  0xce   : > { %v464_v18 = vpop.f32.mrf.mxu1  ;;  %v620_v21 = vpop.permute.xlu0 %619 }
  0xcf   : > { %v465_v19 = vadd.f32 %v464_v18, %v444_v17  ;;  %v484_v20 = vpop.f32.mrf.mxu2  ;;  %v595_v29 = vpop.permute.xlu1 %594 }
  0xd1   : > { %v485_v22 = vadd.f32 %v484_v20, %v465_v19 }
  0xd2   : > { %v504_v23 = vpop.f32.mrf.mxu3 }
  0xd3   : > { %v505_v24 = vadd.f32 %v504_v23, %v485_v22 }
  0xd5   : > { %v524_v25 = vpop.f32.mrf.mxu0 }
  0xd6   : > { %v525_v26 = vadd.f32 %v524_v25, %v505_v24  ;;  %v590_v30 = vpop.permute.xlu0 %589 }
  0xd7   : > { %v544_v27 = vpop.f32.mrf.mxu1  ;;  %v600_v42 = vpop.permute.xlu1 %599 }
  0xd8   : > { %v545_v28 = vadd.f32 %v544_v27, %v525_v26 }
  0xdb   : > { %v564_v31 = vpop.f32.mrf.mxu2 }
  0xdc   : > { %v565_v32 = vadd.f32 %v564_v31, %v545_v28 }
  0xdd   : > { %v584_v33 = vpop.f32.mrf.mxu3 }
  0xde   : > { %v585_v34 = vadd.f32 %v584_v33, %v565_v32  ;;  %v615_v44 = vpop.permute.xlu0 %614 }
  0xe0   : > { %v622_v35 = vperm.slane %v585_v34, 0 }
  0xe2   : > { %v629_v39 = vmul.f32 %v622_v35, %v620_v21  ;;  %v624_v40 = vmul.f32 %v622_v35, %v595_v29  ;;  %v623_v41 = vmul.f32 %v622_v35, %v590_v30  ;;  %v626_v51 = vmul.f32 %v622_v35, %v605_v38 }
  0xe3   : > { %v625_v52 = vmul.f32 %v622_v35, %v600_v42  ;;  %v628_v54 = vmul.f32 %v622_v35, %v615_v44  ;;  %v627_v62 = vmul.f32 %v622_v35, %v610_v60 }
  0xe4   : > { %v639_v45 = vadd.f32 %v1285_v37, %v629_v39  ;;  %v634_v46 = vadd.f32 %v1285_v37, %v624_v40  ;;  %v633_v48 = vadd.f32 %v1285_v37, %v623_v41  ;;  %v636_v57 = vadd.f32 %v1285_v37, %v626_v51 }
  0xe5   : > { %v638_v58 = vadd.f32 %v1285_v37, %v628_v54  ;;  %v635_v59 = vadd.f32 %v1285_v37, %v625_v52  ;;  %v637_v1 = vadd.f32 %v1285_v37, %v627_v62 }
  0xe6   : > { %v660_v50 = vsel %vm659_vm0, %v639_v45, -inf  ;;  %v644_v55 = vsel %vm640_vm1, %v634_v46, -inf  ;;  %v641_v56 = vsel %vm640_vm1, %v633_v48, -inf  ;;  %v650_v61 = vsel %vm640_vm1, %v636_v57, -inf }
  0xe7   : > { %661 = vmax.xlane.f32.xlu1 %v660_v50  ;;  %645 = vmax.xlane.f32.xlu0 %v644_v55  ;;  %v656_v63 = vsel %vm640_vm1, %v638_v58, -inf  ;;  %v647_v0 = vsel %vm640_vm1, %v635_v59, -inf  ;;  %v653_v2 = vsel %vm640_vm1, %v637_v1, -inf }
  0xe8   : > { %642 = vmax.xlane.f32.xlu2 %v641_v56 }
  0xef   : > { %651 = vmax.xlane.f32.xlu1 %v650_v61  ;;  %657 = vmax.xlane.f32.xlu0 %v656_v63 }
  0xf0   : > { %648 = vmax.xlane.f32.xlu2 %v647_v0 }
  0xf8   : > { %654 = vmax.xlane.f32.xlu2 %v653_v2 }
 0x15a   : > { %v662_v11 = vpop.xlane.xlu1 %661  ;;  %v646_v17 = vpop.xlane.xlu0 %645 }
 0x15b   : > { %vm724_vm3 = vcmp.eq.f32.partialorder %v639_v45, %v662_v11  ;;  %v643_v18 = vpop.xlane.xlu2 %642  ;;  %v664_v20 = vsub.f32 %v634_v46, %v646_v17  ;;  %v669_v34 = vsub.f32 %v639_v45, %v662_v11 }
 0x15c   : > { %v725_v19 = vsel %vm724_vm3, %v1967_v6, 10  ;;  %v663_v21 = vsub.f32 %v633_v48, %v643_v18 }
 0x15d   : > { %v726_v22 = vsel %vm720_vm2, %v725_v19, 2147483647  ;;  %v672_v23 = vmul.f32 1.442695, %v664_v20  ;;  %v682_v41 = vmul.f32 1.442695, %v669_v34 }
 0x15e   : > { %v670_v24 = vmul.f32 1.442695, %v663_v21  ;;  %v728_v25 = vshra.s32 %v726_v22, 16 }
 0x15f   : > { %1286 = vpow2.f32 %v672_v23 }
 0x160   : > { %v730_v26 = vcvt.s32.f32 %v728_v25  ;;  %1288 = vpow2.f32 %v670_v24 }
 0x162   : > { %731 = vmin.xlane.f32.xlu1 %v730_v26  ;;  %v652_v27 = vpop.xlane.xlu1 %651  ;;  %v658_v30 = vpop.xlane.xlu0 %657 }
 0x163   : > { %v666_v28 = vsub.f32 %v636_v57, %v652_v27  ;;  %v649_v29 = vpop.xlane.xlu2 %648  ;;  %v668_v38 = vsub.f32 %v638_v58, %v658_v30  ;;  %v727_v57 = vand.u32 65535, %v726_v22 }
 0x164   : > { %v665_v31 = vsub.f32 %v635_v59, %v649_v29 }
 0x165   : > { %v676_v32 = vmul.f32 1.442695, %v666_v28  ;;  %v1971_v33 = vpop.eup %1286  ;;  %v680_v42 = vmul.f32 1.442695, %v668_v38  ;;  %v729_v60 = vcvt.s32.f32 %v727_v57 }
 0x166   : > { %v674_v35 = vmul.f32 1.442695, %v665_v31  ;;  %v1973_v37 = vpop.eup %1288  ;;  %v687_v39 = vsel %vm640_vm1, %v1971_v33, 0.0 }
 0x167   : > { %1290 = vpow2.f32 %v676_v32  ;;  %688 = vadd.xlane.f32.xlu0 %v687_v39  ;;  %v684_v40 = vsel %vm640_vm1, %v1973_v37, 0.0 }
 0x168   : > { %1292 = vpow2.f32 %v674_v35  ;;  %685 = vadd.xlane.f32.xlu2 %v684_v40 }
 0x169   : > { %1294 = vpow2.f32 %v682_v41  ;;  %v1411_v41 = vmov 0.0  }
 0x16a   : > { %1296 = vpow2.f32 %v680_v42 }
 0x16b   : > { %v655_v55 = vpop.xlane.xlu2 %654 }
 0x16c   : > { %v667_v56 = vsub.f32 %v637_v1, %v655_v55 }
 0x16d   : > { %v1979_v44 = vpop.eup %1290 }
 0x16e   : > { %v693_v45 = vsel %vm640_vm1, %v1979_v44, 0.0  ;;  %v1983_v46 = vpop.eup %1292  ;;  %v678_v58 = vmul.f32 1.442695, %v667_v56 }
 0x16f   : > { %694 = vadd.xlane.f32.xlu0 %v693_v45  ;;  %v690_v48 = vsel %vm640_vm1, %v1983_v46, 0.0  ;;  %v1987_v50 = vpop.eup %1294 }
 0x170   : > { %691 = vadd.xlane.f32.xlu2 %v690_v48  ;;  %v1989_v51 = vpop.eup %1296  ;;  %v702_v52 = vsel %vm659_vm0, %v1987_v50, 0.0  ;;  %1298 = vpow2.f32 %v678_v58 }
 0x171   : > { %v699_v54 = vsel %vm640_vm1, %v1989_v51, 0.0 }
 0x176   : > { %v1995_v63 = vpop.eup %1298 }
 0x177   : > { %703 = vadd.xlane.f32.xlu0 %v702_v52  ;;  %v696_v0 = vsel %vm640_vm1, %v1995_v63, 0.0 }
 0x178   : > { %700 = vadd.xlane.f32.xlu2 %v699_v54 }
 0x1d5   : > { %v732_v59 = vpop.xlane.xlu1 %731 }
 0x1d6   : > { %vm733_vm4 = vcmp.eq.f32.partialorder %v730_v26, %v732_v59  ;;  %v738_v28 = vcvt.f32.s32 %v732_v59 }
 0x1d7   : > { %v734_v61 = vsel %vm733_vm4, %v729_v60, inf }
 0x1d8   : > { %735 = vmin.xlane.f32.xlu1 %v734_v61  ;;  %v739_v31 = vshll.u32 %v738_v28, 16 }
 0x1da   : > { %v689_v62 = vpop.xlane.xlu0 %688 }
 0x1db   : > { %v686_v26 = vpop.xlane.xlu2 %685 }
 0x1e0   : > { %697 = vadd.xlane.f32.xlu1 %v696_v0 }
 0x1e2   : > { %v695_v2 = vpop.xlane.xlu0 %694 }
 0x1e3   : > { %v692_v27 = vpop.xlane.xlu2 %691 }
 0x1ea   : > { %v704_v5 = vpop.xlane.xlu0 %703 }
 0x1eb   : > { %1300 = vrcp.f32 %v704_v5  ;;  %v716_v18 = vand.u32 2147483648, %v704_v5  ;;  %v714_v20 = vand.u32 2147483647, %v704_v5  ;;  %vm710_vm6 = vweird.f32 %v704_v5  ;;  %v701_v29 = vpop.xlane.xlu2 %700 }
 0x1ec   : > { %1302 = vrcp.f32 %v689_v62 }
 0x1ed   : > { %v717_v22 = vor.u32 1.1754944e-38, %v716_v18  ;;  %vm715_vm8 = vcmp.eq.f32.partialorder %v714_v20, 8.507059e+37  ;;  %1304 = vrcp.f32 %v686_v26 }
 0x1ee   : > { %1306 = vrcp.f32 %v692_v27 }
 0x1ef   : > { %1308 = vrcp.f32 %v695_v2 }
 0x1f0   : > { %1310 = vrcp.f32 %v701_v29 }
 0x1f1   : > { %v1301_v1 = vpop.eup %1300 }
 0x1f2   : > { %v706_v11 = vmul.f32 %v1301_v1, %v704_v5  ;;  %vm711_vm5 = vweird.f32 %v1301_v1  ;;  %v1303_v34 = vpop.eup %1302 }
 0x1f3   : > { %vm712_vm7 = vmor %vm710_vm6, %vm711_vm5  ;;  %v1305_v35 = vpop.eup %1304  ;;  %v2011_v52 = vmul.f32 %v1303_v34, %v1971_v33 }
 0x1f4   : > { %v707_v17 = vsub.f32 1.0, %v706_v11  ;;  %v1307_v39 = vpop.eup %1306  ;;  %v751_v54 = vmul.f32 %v1305_v35, %v1973_v37  ;;  %v2029_v37 = vmul.f32 %v1301_v1, %v1987_v50 }
 0x1f5   : > { %v1309_v40 = vpop.eup %1308  ;;  %v2015_v55 = vmul.f32 %v1307_v39, %v1983_v46 }
 0x1f6   : > { %v708_v19 = vmul.f32 %v1301_v1, %v707_v17  ;;  %v1311_v45 = vpop.eup %1310  ;;  %v2023_v59 = vmul.f32 %v1309_v40, %v1979_v44 }
 0x1f7   : > { %v2026_v33 = vmul.f32 %v1311_v45, %v1989_v51 }
 0x1f8   : > { %v709_v21 = vadd.f32 %v1301_v1, %v708_v19 }
 0x1fa   : > { %v713_v23 = vsel %vm712_vm7, %v1301_v1, %v709_v21 }
 0x1fb   : > { %v718_v24 = vsel %vm715_vm8, %v717_v22, %v713_v23 }
 0x1fc   : > { %v719_v25 = vmul.f32 %v1987_v50, %v718_v24 }
 0x1fe   : > { %721 = vst.msk [vmem:[%s252_s17 - $0x1] sm:$0x2] %vm720_vm2, %v719_v25 }
 0x24b   : > { %v736_v30 = vpop.xlane.xlu1 %735 }
 0x24c   : > { %v737_v32 = vcvt.f32.s32 %v736_v30 }
 0x24e   : > { %v740_v38 = vadd.s32 %v739_v31, %v737_v32 }
 0x250   : > { %vm741_vm9 = vcmp.eq.s32.totalorder %v1967_v6, %v740_v38 }
 0x251   : > { %v1215_v42 = vsel %vm741_vm9, 1.0, %v1411_v41 }
 0x252   : > { %v2008_v48 = vperm.slane %v1215_v42, 1 }
 0x253   : > { %v698_v56 = vpop.xlane.xlu1 %697 }
 0x254   : > { %1312 = vrcp.f32 %v698_v56  ;;  %v760_v57 = vmul.f32 %v2008_v48, %v2011_v52  ;;  %v759_v6 = vmul.f32 %v2008_v48, %v751_v54  ;;  %v761_v58 = vmul.f32 %v2008_v48, %v2015_v55  ;;  %v395_v56 = vld [vmem:[%s2221_s2 + $0x48] sm:$0x3] }
 0x255   : > { %v794_v46 = vsub.f32 %v2008_v48, %v751_v54  ;;  %v796_v0 = vsub.f32 %v2008_v48, %v2015_v55  ;;  %v795_v44 = vsub.f32 %v2008_v48, %v2011_v52  ;;  %v799_v50 = vsub.f32 %v2008_v48, %v2026_v33  ;;  %v389_v54 = vld [vmem:[%s2221_s2 + $0x18] sm:$0xff]  ;;  %v394_v55 = vld [vmem:[%s2221_s2 + $0x40] sm:$0x3]  ;;  %1218 = vmatpush.msk.msra.mxu1 %vm866_vm10, %v395_v56 }
 0x256   : > { %v769_v60 = vsel %vm640_vm1, %v760_v57, 0.0  ;;  %v766_v61 = vsel %vm640_vm1, %v759_v6, 0.0  ;;  %v772_v62 = vsel %vm640_vm1, %v761_v58, 0.0  ;;  %v797_v51 = vsub.f32 %v2008_v48, %v2023_v59  ;;  %1216 = vmatpush.msk.msra.mxu0 %vm866_vm10, %v394_v55  ;;  %v386_v6 = vld [vmem:[%s2221_s2] sm:$0xff]  ;;  %v387_v58 = vld [vmem:[%s2221_s2 + $0x8] sm:$0xff] }
 0x257   : > { %770 = vadd.xlane.f32.xlu2 %v769_v60  ;;  %767 = vadd.xlane.f32.xlu1 %v766_v61  ;;  %v800_v2 = vsub.f32 %v2008_v48, %v2029_v37  ;;  %v762_v1 = vmul.f32 %v2008_v48, %v2023_v59  ;;  %v764_v11 = vmul.f32 %v2008_v48, %v2026_v33  ;;  %v400_v60 = vld [vmem:[%s2221_s2 + $0x70] sm:$0x3]  ;;  %v401_v61 = vld [vmem:[%s2221_s2 + $0x78] sm:$0x3] }
 0x258   : > { %773 = vadd.xlane.f32.xlu0 %v772_v62  ;;  %v765_v23 = vmul.f32 %v2008_v48, %v2029_v37  ;;  %v392_v62 = vld [vmem:[%s2221_s2 + $0x30] sm:$0xff]  ;;  %906 = vmatpush.msra.mxu0 %v386_v6 }
 0x259   : > { %v775_v20 = vsel %vm640_vm1, %v762_v1, 0.0  ;;  %v781_v21 = vsel %vm640_vm1, %v764_v11, 0.0  ;;  %926 = vmatpush.msra.mxu1 %v387_v58  ;;  %v398_v1 = vld [vmem:[%s2221_s2 + $0x60] sm:$0x3]  ;;  %v399_v11 = vld [vmem:[%s2221_s2 + $0x68] sm:$0x3] }
 0x25a   : > { %v1313_v5 = vpop.eup %1312  ;;  %1224 = vmatpush.msk.msrb.mxu0 %vm866_vm10, %v398_v1 }
 0x25b   : > { %v2050_v17 = vmul.f32 %v1313_v5, %v1995_v63  ;;  %v784_v63 = vsel %vm659_vm0, %v765_v23, 0.0  ;;  %v393_v5 = vld [vmem:[%s2221_s2 + $0x38] sm:$0xff]  ;;  %1226 = vmatpush.msk.msrb.mxu1 %vm866_vm10, %v399_v11 }
 0x25d   : > { %v763_v18 = vmul.f32 %v2008_v48, %v2050_v17  ;;  %v798_v19 = vsub.f32 %v2008_v48, %v2050_v17 }
 0x25f   : > { %776 = vadd.xlane.f32.xlu1 %v775_v20  ;;  %v778_v22 = vsel %vm640_vm1, %v763_v18, 0.0  ;;  %v390_v18 = vld [vmem:[%s2221_s2 + $0x20] sm:$0xff]  ;;  %v391_v20 = vld [vmem:[%s2221_s2 + $0x28] sm:$0xff] }
 0x260   : > { %782 = vadd.xlane.f32.xlu0 %v781_v21  ;;  %779 = vadd.xlane.f32.xlu2 %v778_v22 }
 0x261   : > { %986 = vmatpush.msrb.mxu0 %v390_v18  ;;  %1006 = vmatpush.msrb.mxu1 %v391_v20 }
 0x267   : > { %785 = vadd.xlane.f32.xlu1 %v784_v63 }
 0x2ca   : > { %v768_v24 = vpop.xlane.xlu1 %767  ;;  %v771_v25 = vpop.xlane.xlu2 %770 }
 0x2cb   : > { %v787_v26 = vmul.f32 %v768_v24, %v1936_v13  ;;  %v774_v27 = vpop.xlane.xlu0 %773  ;;  %v788_v28 = vmul.f32 %v771_v25, %v1919_v10 }
 0x2cc   : > { %v789_v29 = vmul.f32 %v774_v27, %v1941_v14 }
 0x2cd   : > { %803 = vperm.xlu2 %1284, %v787_v26   ;;  %808 = vperm.xlu0 %1282, %v788_v28  }
 0x2ce   : > { %813 = vperm.xlu1 %1283, %v789_v29  }
 0x2d2   : > { %v777_v30 = vpop.xlane.xlu1 %776 }
 0x2d3   : > { %v790_v31 = vmul.f32 %v777_v30, %v1928_v12  ;;  %v783_v32 = vpop.xlane.xlu0 %782  ;;  %v780_v34 = vpop.xlane.xlu2 %779 }
 0x2d4   : > { %v792_v35 = vmul.f32 %v783_v32, %v1954_v16  ;;  %v791_v38 = vmul.f32 %v780_v34, %v1946_v15  ;;  %v396_v16 = vld [vmem:[%s2221_s2 + $0x50] sm:$0x3]  ;;  %v397_v15 = vld [vmem:[%s2221_s2 + $0x58] sm:$0x3] }
 0x2d5   : > { %818 = vperm.xlu0 %1282, %v790_v31   ;;  %1220 = vmatpush.msk.msra.mxu2 %vm866_vm10, %v396_v16 }
 0x2d6   : > { %828 = vperm.xlu1 %1283, %v792_v35   ;;  %823 = vperm.xlu2 %1284, %v791_v38  }
 0x2d7   : > { %1222 = vmatpush.msk.msra.mxu3 %vm866_vm10, %v397_v15 }
 0x2d9   : > { %966 = vmatpush.msra.mxu3 %v389_v54 }
 0x2da   : > { %v786_v13 = vpop.xlane.xlu1 %785 }
 0x2db   : > { %v793_v10 = vmul.f32 %v786_v13, %v1914_v9  ;;  %v388_v9 = vld [vmem:[%s2221_s2 + $0x10] sm:$0xff]  ;;  %1230 = vmatpush.msk.msrb.mxu3 %vm866_vm10, %v401_v61 }
 0x2dc   : > { %946 = vmatpush.msra.mxu2 %v388_v9 }
 0x2dd   : > { %833 = vperm.xlu0 %1282, %v793_v10   ;;  %1046 = vmatpush.msrb.mxu3 %v393_v5 }
 0x2de   : > { %1228 = vmatpush.msk.msrb.mxu2 %vm866_vm10, %v400_v60 }
 0x2e0   : > { %1026 = vmatpush.msrb.mxu2 %v392_v62 }
 0x327   : > { %v804_v14 = vpop.permute.xlu2 %803 }
 0x328   : > { %v836_v39 = vmul.f32 %v804_v14, %v794_v46 }
 0x32a   : > { %v843_v41 = vsel %vm640_vm1, %v836_v39, 0.0 }
 0x33f   : > { %v809_v40 = vpop.permute.xlu0 %808 }
 0x340   : > { %v814_v42 = vpop.permute.xlu1 %813  ;;  %v837_v12 = vmul.f32 %v809_v40, %v795_v44 }
 0x341   : > { %v838_v45 = vmul.f32 %v814_v42, %v796_v0  ;;  %v824_v0 = vpop.permute.xlu2 %823 }
 0x342   : > { %v844_v52 = vsel %vm640_vm1, %v837_v12, 0.0  ;;  %v840_v22 = vmul.f32 %v824_v0, %v798_v19 }
 0x343   : > { %v845_v57 = vadd.f32 %v844_v52, %v843_v41  ;;  %v846_v46 = vsel %vm640_vm1, %v838_v45, 0.0 }
 0x344   : > { %v850_v27 = vsel %vm640_vm1, %v840_v22, 0.0 }
 0x345   : > { %v847_v44 = vadd.f32 %v846_v46, %v845_v57 }
 0x347   : > { %v819_v21 = vpop.permute.xlu0 %818 }
 0x348   : > { %v829_v23 = vpop.permute.xlu1 %828  ;;  %v839_v63 = vmul.f32 %v819_v21, %v797_v51 }
 0x349   : > { %v841_v24 = vmul.f32 %v829_v23, %v799_v50 }
 0x34a   : > { %v848_v25 = vsel %vm640_vm1, %v839_v63, 0.0 }
 0x34b   : > { %v849_v26 = vadd.f32 %v848_v25, %v847_v44  ;;  %v852_v19 = vsel %vm640_vm1, %v841_v24, 0.0 }
 0x34d   : > { %v851_v17 = vadd.f32 %v850_v27, %v849_v26 }
 0x34f   : > { %v834_v28 = vpop.permute.xlu0 %833  ;;  %v853_v29 = vadd.f32 %v852_v19, %v851_v17 }
 0x350   : > { %v842_v59 = vmul.f32 %v834_v28, %v800_v2 }
 0x352   : > { %v854_v51 = vsel %vm659_vm0, %v842_v59, 0.0 }
 0x353   : > { %v855_v30 = vadd.f32 %v854_v51, %v853_v29 }
 0x355   : > { %v856_v33 = vrot.slane %v855_v30, 4 }
 0x357   : > { %v857_v50 = vadd.f32 %v856_v33, %v855_v30 }
 0x359   : > { %v858_v31 = vrot.slane %v857_v50, 2 }
 0x35b   : > { %v859_v32 = vadd.f32 %v858_v31, %v857_v50 }
 0x35d   : > { %v860_v34 = vrot.slane %v859_v32, 1 }
 0x35f   : > { %v861_v35 = vadd.f32 %v860_v34, %v859_v32 }
 0x361   : > { %v862_v38 = vmul.f32 0.02, %v861_v35 }
 0x363   : > { %1217 = vmatmul.msk.f32.vlgmr.msra.gmra.mxu0 %vm640_vm1, %v862_v38  ;;  %1219 = vmatmul.msk.f32.vlgmr.msra.gmra.mxu1 %vm640_vm1, %v862_v38 }
 0x364   : > { %1221 = vmatmul.msk.f32.vlgmr.msra.gmra.mxu2 %vm640_vm1, %v862_v38  ;;  %1223 = vmatmul.msk.f32.vlgmr.msra.gmra.mxu3 %vm640_vm1, %v862_v38 }
 0x36b   : > { %1225 = vmatmul.msk.f32.vlgmr.msrb.gmra.mxu0 %vm640_vm1, %v862_v38  ;;  %1227 = vmatmul.msk.f32.vlgmr.msrb.gmra.mxu1 %vm640_vm1, %v862_v38 }
 0x36c   : > { %1229 = vmatmul.msk.f32.vlgmr.msrb.gmra.mxu2 %vm640_vm1, %v862_v38  ;;  %1231 = vmatmul.msk.f32.vlgmr.msrb.gmra.mxu3 %vm640_vm1, %v862_v38 }
 0x36d   : > { %1341 = shalt.err (!%p1338_p3)
}
 0x36e   : > { %1237 = dma.vmem_to_hbm [thread:$0]  (%p1485_p5), %s1120_s29, 16, %s1122_s15, %s1095_s19   ;;  %vm1076_vm11 = vcmask 1042434   ;;  %vm1074_vm12 = vcmask 1040384   ;;  %vm1079_vm13 = vcmask 1044484   ;;  %vm1081_vm14 = vcmask 1046534  }
 0x36f   : > { %s1213_s17 = sshll.u32 %s2000_s16, 3  ;;  %s1233_s12 = sshll.u32 %s1468_s25, 3  ;;  %vm1083_vm15 = vcmask 1045508   ;;  %vm1085_vm0 = vcmask 1043456  }
 0x370   : > { %s1104_s29 = scalar_lea.hbm %s2224_s5, %s1233_s12  ;;  %s246_s25 = scalar_lea.vmem [#allocation2], %s1213_s17 }
 0x371   : > { %s1106_s15 = sshll.u32 %s246_s25, 4  ;;  %s1108_s19 = sshll.u32 %s1104_s29, 4  ;;  %s1107_s15 = int_to_ptr.vmem [resolvable:$true] %s1106_s15  ;;  %s1109_s19 = int_to_ptr.hbm [resolvable:$true] %s1108_s19 }
 0x372   : > { %s1090_s28 = scalar_lea.sflag [#allocation3], %s2000_s16  ;;  %s1356_s18 = sshra.s32 %s1109_s19, 4  ;;  %s1357_s18 = int_to_ptr.hbm [resolvable:$true] %s1356_s18 }
 0x373   : > { %s1358_s20 = scalar_lea.hbm %s1357_s18, 8  ;;  %s1362_s10 = scalar_lea.hbm %s2224_s5, 16 }
 0x374   : > { %p1359_p4 = scmp.ne.s32.totalorder %s1357_s18, %s1358_s20  ;;  %p1363_p9 = scmp.lt.s32.totalorder %s1357_s18, %s2224_s5 }
 0x375   : > { %p1364_p10 = scmp.lt.s32.totalorder %s1362_s10, %s1358_s20 }
 0x376   : > { %p1360_p7 = pnand %p1359_p4, %p1485_p5 }
 0x377   : > { %p1365_p11 = por %p1364_p10, %p1363_p9 }
 0x378   : > { %p1361_p8 = pneg %p1360_p7 }
 0x37a   : > { %p1366_p12 = pnand %p1365_p11, %p1361_p8 }
 0x3e0   : > { %v908_v48 = vpop.f32.mrf.mxu0  ;;  %v928_v37 = vpop.f32.mrf.mxu1 }
 0x3e1   : > { %v1052_v41 = vmul.f32 %v928_v37, %v412_v53  ;;  %v1051_v52 = vmul.f32 %v908_v48, %v411_v47 }
 0x3e3   : > { %v1067_v15 = vrot.slane %v1052_v41, 7 }
 0x3e7   : > { %v948_v2 = vpop.f32.mrf.mxu2  ;;  %v968_v13 = vpop.f32.mrf.mxu3 }
 0x3e8   : > { %v988_v10 = vpop.f32.mrf.mxu0  ;;  %v1008_v14 = vpop.f32.mrf.mxu1  ;;  %v1053_v39 = vmul.f32 %v948_v2, %v413_v43  ;;  %v1054_v40 = vmul.f32 %v968_v13, %v414_v49 }
 0x3e9   : > { %v1055_v42 = vmul.f32 %v988_v10, %v415_v3  ;;  %v1056_v12 = vmul.f32 %v1008_v14, %v416_v7 }
 0x3ea   : > { %v1068_v45 = vrot.slane %v1053_v39, 6  ;;  %v1069_v16 = vrot.slane %v1054_v40, 5 }
 0x3eb   : > { %v1070_v49 = vrot.slane %v1055_v42, 4  ;;  %v1071_v53 = vrot.slane %v1056_v12, 3 }
 0x3ec   : > { %v1077_v54 = vsel %vm1076_vm11, %v1068_v45, %v1069_v16 }
 0x3ed   : > { %v1080_v57 = vsel %vm1079_vm13, %v1070_v49, %v1071_v53 }
 0x3ef   : > { %v1028_v9 = vpop.f32.mrf.mxu2  ;;  %v1048_v43 = vpop.f32.mrf.mxu3 }
 0x3f0   : > { %v1057_v3 = vmul.f32 %v1028_v9, %v417_v4  ;;  %v1058_v7 = vmul.f32 %v1048_v43, %v418_v8  ;;  %v1075_v4 = vsel %vm1074_vm12, %v1051_v52, %v1067_v15 }
 0x3f1   : > { %v1078_v8 = vsel %vm866_vm10, %v1075_v4, %v1077_v54 }
 0x3f2   : > { %v1072_v55 = vrot.slane %v1057_v3, 2  ;;  %v1073_v56 = vrot.slane %v1058_v7, 1 }
 0x3f4   : > { %v1082_v6 = vsel %vm1081_vm14, %v1072_v55, %v1073_v56 }
 0x3f5   : > { %v1084_v58 = vsel %vm1083_vm15, %v1080_v57, %v1082_v6 }
 0x3f6   : > { %v1086_v46 = vsel %vm1085_vm0, %v1078_v8, %v1084_v58 }
 0x3f7   : > { %1088 = vst [vmem:[%s246_s25] sm:$0xff] %v1086_v46 }
 0x3f8   : > { %1369 = shalt.err (!%p1366_p12)
}
 0x3f9   : > { %1236 = dma.vmem_to_hbm [thread:$0]  (%p1485_p5), %s1107_s15, 128, %s1109_s19, %s1090_s28  }
 0x3fa PF: > { %p1247_p13 = scmp.ge.s32.totalorder %s1408_s24, 2  ;;  %s1133_s16 = sand.u32 1, %s1396_s21  }
 0x3fb   : > { %s1134_s12 = scalar_lea.sflag [#allocation3], %s1133_s16 }
 0x3fc   : > { %p1241_p0 = pnand %p1247_p13, %p1489_p6 }
 0x3fe   : > { %p1242_p1 = pneg %p1241_p0 }
 0x400   : > { %1387 = dma.done.wait (%p1242_p1), %s1134_s12, 128  }
 0x401   : > { %1389 = vsyncadd (%p1242_p1), %s1134_s12, 4294967168  ;;  %s1144_s13 = scalar_lea.sflag [#allocation5], %s1133_s16 }
 0x402   : > { %1391 = dma.done.wait (%p1242_p1), %s1144_s13, 16  }
 0x403   : > { %1393 = vsyncadd (%p1242_p1), %s1144_s13, 4294967280  ;;  %p20_p5 = scmp.ge.s32.totalorder %s1472_s27, 4   ;;  %s2228_s21 = smov %s1400_s22 }
 0x404   : > { %s2229_s22 = smov %s1404_s23  ;;  %s2230_s23 = smov %s1483_s30 }
 0x405   : > { %s2231_s24 = smov %s1472_s27  ;;  %22 = sbr.rel (!%p20_p5) target bundleno = 5 (0x5), region = 92 }
 0x40a   :  { %1149 = vsyncpa [#allocation3], 1 }
 0x40b   :  { %1151 = vsyncpa [#allocation3 + $0x1], 1 }
 0x40c   :  { %1152 = vsyncpa [#allocation5], 1 }
 0x40d   :  { %1154 = vsyncpa [#allocation5 + $0x1], 1 }

</bundles_post_ra>
